<compile_context>
chip_gen: v7x
topology: tpu7x:2x2x1
jax: 0.10.0
libtpu: 0.0.40
codegen_flags: <defaults>
</compile_context>

<pallas_src>
import numpy as np

import jax
import jax.numpy as jnp
from jax.experimental import pallas as pl
from jax.experimental.pallas import tpu as pltpu


def _round_up(x, m):
    return ((x + m - 1) // m) * m


# ----------------------------------------------------------------------------
# Fused whole-tree kernel: one grid step per tree level.
# ----------------------------------------------------------------------------
def _tree_level_kernel(sel_ref, x_ref, w_ref, b_ref, h_ref, c_ref):
    lvl = pl.program_id(0)
    NP, HP = h_ref.shape

    # Level 0: children are all zero; also defines the resident state buffers.
    @pl.when(lvl == 0)
    def _():
        h_ref[...] = jnp.zeros_like(h_ref)
        c_ref[...] = jnp.zeros_like(c_ref)

    # On-device child gather: one-hot selection matmuls against the resident
    # previous-level state.  Missing children have an all-zero selection row,
    # which yields exact zeros (matching the PyTorch zero h/c).
    hc_prev = jnp.concatenate([h_ref[...], c_ref[...]], axis=1)      # (NP, 2*HP) f32
    g_l = jnp.dot(sel_ref[0], hc_prev, preferred_element_type=jnp.float32)
    g_r = jnp.dot(sel_ref[1], hc_prev, preferred_element_type=jnp.float32)
    h_l, c_l = g_l[:, :HP], g_l[:, HP:]
    h_r, c_r = g_r[:, :HP], g_r[:, HP:]

    # Single fused pre-activation matmul: [x | h_l | h_r] @ [Wx; Ul; Ur].
    operand = jnp.concatenate(
        [x_ref[...], h_l.astype(jnp.bfloat16), h_r.astype(jnp.bfloat16)],
        axis=1)                                                      # (NP, EP+2HP) bf16
    pre = jnp.dot(operand, w_ref[...], preferred_element_type=jnp.float32)
    pre = pre + b_ref[...]                                           # (NP, 5*HP) f32

    # Lane-dense (128-wide) gate slabs.
    i   = jax.nn.sigmoid(pre[:, 0 * HP:1 * HP])
    f_l = jax.nn.sigmoid(pre[:, 1 * HP:2 * HP])
    f_r = jax.nn.sigmoid(pre[:, 2 * HP:3 * HP])
    o   = jax.nn.sigmoid(pre[:, 3 * HP:4 * HP])
    u   = jnp.tanh(pre[:, 4 * HP:5 * HP])

    c = i * u + f_l * c_l + f_r * c_r
    h = o * jnp.tanh(c)

    # Overwrite the resident state; the last level's values are what gets
    # written back to HBM as the kernel outputs.
    h_ref[...] = h
    c_ref[...] = c


@jax.jit
def _hybrid_tree_lstm_fused(embedding, tokens, xpos, sel, w_fused, bias):
    """Runs the whole tree in one pallas_call.

    embedding: (V, E) f32       tokens: (T,) i32       xpos: (L, NP) i32
    sel:       (L, 2, NP, NP) f32 one-hot child selectors (left, right)
    w_fused:   (EP+2*HP, 5*HP) bf16 packed weights       bias: (1, 5*HP) f32
    """
    L, NP = xpos.shape
    K, GP = w_fused.shape
    HP = GP // 5
    EP = K - 2 * HP
    E = embedding.shape[1]

    # Device-side embedding gather for every (level, node) x input, padded to
    # a lane-aligned EP and cast to bf16 for the MXU.
    emb_seq = jnp.take(embedding, tokens, axis=0)                    # (T, E)
    x = jnp.take(emb_seq, xpos.reshape(-1), axis=0).reshape(L, NP, E)
    x = jnp.pad(x, ((0, 0), (0, 0), (0, EP - E))).astype(jnp.bfloat16)

    grid_spec = pltpu.PrefetchScalarGridSpec(
        num_scalar_prefetch=0,
        grid=(L,),
        in_specs=[
            pl.BlockSpec((None, 2, NP, NP), lambda l: (l, 0, 0, 0)),  # selectors
            pl.BlockSpec((None, NP, EP), lambda l: (l, 0, 0)),        # x per level
            pl.BlockSpec((K, GP), lambda l: (0, 0)),                  # weights: DMA'd once
            pl.BlockSpec((1, GP), lambda l: (0, 0)),                  # bias: DMA'd once
        ],
        out_specs=(
            pl.BlockSpec((NP, HP), lambda l: (0, 0)),                 # h (VMEM-resident state)
            pl.BlockSpec((NP, HP), lambda l: (0, 0)),                 # c (VMEM-resident state)
        ),
    )

    return pl.pallas_call(
        _tree_level_kernel,
        grid_spec=grid_spec,
        out_shape=(jax.ShapeDtypeStruct((NP, HP), jnp.float32),
                   jax.ShapeDtypeStruct((NP, HP), jnp.float32)),
        compiler_params=pltpu.CompilerParams(
            dimension_semantics=("arbitrary",)),   # levels are sequential
    )(sel, x, w_fused, bias)


# ----------------------------------------------------------------------------
# Module wrapper (mirrors the PyTorch HybridTreeLSTM forward semantics).
# ----------------------------------------------------------------------------
class HybridTreeLSTM:
    def __init__(self, embed_size, hidden_size, vocab_size,
                 pretrained_embeddings=None, key=None):
        self.embed_size = E = embed_size
        self.hidden_size = H = hidden_size
        if key is None:
            key = jax.random.PRNGKey(0)
        keys = jax.random.split(key, 32)
        kit = iter(keys)

        if pretrained_embeddings is not None:
            self.embedding = jnp.asarray(pretrained_embeddings, jnp.float32)
        else:
            self.embedding = jax.random.normal(
                next(kit), (vocab_size, E), dtype=jnp.float32)

        def linear(in_f, out_f):
            # PyTorch nn.Linear-style uniform(+-1/sqrt(in_f)) init, weights
            # stored pre-transposed as (in_f, out_f).
            bound = 1.0 / (in_f ** 0.5)
            w = jax.random.uniform(next(kit), (in_f, out_f), jnp.float32, -bound, bound)
            b = jax.random.uniform(next(kit), (out_f,), jnp.float32, -bound, bound)
            return w, b

        names = ["w_i", "u_i_l", "u_i_r", "w_f", "u_f_ll", "u_f_lr", "u_f_rl",
                 "u_f_rr", "w_o", "u_o_l", "u_o_r", "w_u", "u_u_l", "u_u_r"]
        p = {}
        for name in names:
            in_f = E if name.startswith("w_") else H
            p[name] = linear(in_f, H)
        self._ref = p  # kept (small) for the pure-JAX reference check

        # -------- packed, lane-dense, bf16 weights for the fused kernel -----
        self.HP = _round_up(H, 128)
        self.EP = _round_up(E, 128)
        K, GP = self.EP + 2 * self.HP, 5 * self.HP

        # gate order [i, f_l, f_r, o, u]; Ul applies to h_left, Ur to h_right.
        wx = [p["w_i"], p["w_f"], p["w_f"], p["w_o"], p["w_u"]]
        ul = [p["u_i_l"], p["u_f_ll"], p["u_f_rr"], p["u_o_l"], p["u_u_l"]]
        ur = [p["u_i_r"], p["u_f_lr"], p["u_f_rl"], p["u_o_r"], p["u_u_r"]]

        W = np.zeros((K, GP), np.float32)
        b = np.zeros((1, GP), np.float32)
        for g in range(5):
            c0 = g * self.HP
            W[0:E,                                c0:c0 + H] = np.asarray(wx[g][0])
            W[self.EP:self.EP + H,                c0:c0 + H] = np.asarray(ul[g][0])
            W[self.EP + self.HP:self.EP + self.HP + H, c0:c0 + H] = np.asarray(ur[g][0])
            b[0, c0:c0 + H] = np.asarray(wx[g][1] + ul[g][1] + ur[g][1])
        self.W_fused = jnp.asarray(W).astype(jnp.bfloat16)
        self.bias = jnp.asarray(b)

    # ---------------- fused Pallas forward --------------------------------
    def forward(self, constituency_tree, dependency_tags, input_seq):
        L = len(constituency_tree)
        max_nodes = max(len(level) for level in constituency_tree)
        NP = _round_up(max(max_nodes, 8), 8)   # fixed node bucket (no recompiles per level)

        sel = np.zeros((L, 2, NP, NP), np.float32)
        xpos = np.zeros((L, NP), np.int32)
        for li, level in enumerate(constituency_tree):
            for ni, node in enumerate(level):
                if li == 0:
                    xpos[li, ni] = node[0]
                else:
                    xpos[li, ni] = dependency_tags[li - 1][ni]
                    sel[li, 0, ni, node[0]] = 1.0
                    if len(node) > 1:
                        sel[li, 1, ni, node[1]] = 1.0

        tokens = jnp.asarray([int(t) for t in input_seq], jnp.int32)
        h_pad, c_pad = _hybrid_tree_lstm_fused(
            self.embedding, tokens, jnp.asarray(xpos), jnp.asarray(sel),
            self.W_fused, self.bias)

        H = self.hidden_size
        n_last = len(constituency_tree[-1])
        h_list = [h_pad[n, :H] for n in range(n_last)]
        c_list = [c_pad[n, :H] for n in range(n_last)]
        return h_list, c_list

    # ---------------- pure-JAX f32 reference (for validation) -------------
    def _cell_ref(self, x, hl, hr, cl, cr):
        p = self._ref
        lin = lambda n, v: v @ p[n][0] + p[n][1]
        i   = jax.nn.sigmoid(lin("w_i", x) + lin("u_i_l", hl) + lin("u_i_r", hr))
        f_l = jax.nn.sigmoid(lin("w_f", x) + lin("u_f_ll", hl) + lin("u_f_lr", hr))
        f_r = jax.nn.sigmoid(lin("w_f", x) + lin("u_f_rl", hr) + lin("u_f_rr", hl))
        o   = jax.nn.sigmoid(lin("w_o", x) + lin("u_o_l", hl) + lin("u_o_r", hr))
        u   = jnp.tanh(lin("w_u", x) + lin("u_u_l", hl) + lin("u_u_r", hr))
        c = i * u + f_l * cl + f_r * cr
        h = o * jnp.tanh(c)
        return h, c

    def forward_reference(self, constituency_tree, dependency_tags, input_seq):
        H = self.hidden_size
        emb = [self.embedding[int(t)] for t in input_seq]
        zeros_h = jnp.zeros((H,), jnp.float32)
        cur_h, cur_c = [], []
        first = True
        for li, level in enumerate(constituency_tree):
            nxt_h, nxt_c = [], []
            for ni, node in enumerate(level):
                if first:
                    x = emb[node[0]]
                    hl = hr = cl = cr = zeros_h
                elif len(node) == 1:
                    x = emb[dependency_tags[li - 1][ni]]
                    hl, cl = cur_h[node[0]], cur_c[node[0]]
                    hr, cr = zeros_h, zeros_h
                else:
                    x = emb[dependency_tags[li - 1][ni]]
                    hl, cl = cur_h[node[0]], cur_c[node[0]]
                    hr, cr = cur_h[node[1]], cur_c[node[1]]
                h, c = self._cell_ref(x, hl, hr, cl, cr)
                nxt_h.append(h)
                nxt_c.append(c)
            cur_h, cur_c = nxt_h, nxt_c
            first = False
        return cur_h, cur_c


if __name__ == "__main__":
    embed_size = 32
    hidden_size = 32
    vocab_size = 50
    seq_len = 4

    key = jax.random.PRNGKey(0)
    k_model, k_seq = jax.random.split(key)

    model = HybridTreeLSTM(embed_size, hidden_size, vocab_size,
                           pretrained_embeddings=None, key=k_model)

    input_seq = [int(t) for t in
                 jax.random.randint(k_seq, (seq_len,), 0, vocab_size)]

    # Small constituency tree over 4 leaves (exercises leaf, unary and binary
    # nodes); dependency_tags[l-1][n] gives the input-position used for x at
    # non-leaf levels, exactly as in the PyTorch reference.
    constituency_tree = [
        [[0], [1], [2], [3]],   # level 0: leaves
        [[0, 1], [2, 3]],       # level 1: two binary merges
        [[0], [1]],             # level 2: two unary nodes
        [[0, 1]],               # level 3: root
    ]
    dependency_tags = [
        [0, 2],                 # for level 1 nodes
        [1, 3],                 # for level 2 nodes
        [2],                    # for level 3 node
    ]

    h_list, c_list = model.forward(constituency_tree, dependency_tags, input_seq)
    jax.block_until_ready(h_list)
    jax.block_until_ready(c_list)

    # Validate against a pure-JAX f32 reference (kernel matmuls are bf16).
    h_ref, c_ref = model.forward_reference(constituency_tree, dependency_tags, input_seq)

    assert len(h_list) == 1 and h_list[0].shape == (hidden_size,)
    assert len(c_list) == 1 and c_list[0].shape == (hidden_size,)
    assert bool(jnp.all(jnp.isfinite(h_list[0]))) and bool(jnp.all(jnp.isfinite(c_list[0])))
    max_err = max(float(jnp.max(jnp.abs(h_list[0] - h_ref[0]))),
                  float(jnp.max(jnp.abs(c_list[0] - c_ref[0]))))
    assert max_err < 5e-2, f"kernel/reference mismatch: max abs err = {max_err}"
    print("KERNEL_OK")
</pallas_src>

<mosaic_0001>
module attributes {stable_mosaic.version = 11 : i64} {
  func.func @_tree_level_kernel(%arg0: i32, %arg1: memref<1x2x8x8xf32, #tpu.memory_space<vmem>>, %arg2: memref<1x8x128xbf16, #tpu.memory_space<vmem>>, %arg3: memref<384x640xbf16, #tpu.memory_space<vmem>>, %arg4: memref<1x640xf32, #tpu.memory_space<vmem>>, %arg5: memref<8x128xf32, #tpu.memory_space<vmem>>, %arg6: memref<8x128xf32, #tpu.memory_space<vmem>>) attributes {dimension_semantics = [#tpu.dimension_semantics<arbitrary>], iteration_bounds = array<i64: 4>, scalar_prefetch = 0 : i64, scratch_operands = 0 : i64, tpu.core_type = #tpu.core_type<tc>, window_params = [{transform_indices = @transform_0, window_bounds = array<i64: 1, 2, 8, 8>}, {transform_indices = @transform_1, window_bounds = array<i64: 1, 8, 128>}, {pipeline_mode = #tpu.pipeline_mode<synchronous>, transform_indices = @transform_2, window_bounds = array<i64: 384, 640>}, {pipeline_mode = #tpu.pipeline_mode<synchronous>, transform_indices = @transform_3, window_bounds = array<i64: 1, 640>}, {pipeline_mode = #tpu.pipeline_mode<synchronous>, transform_indices = @transform_4, window_bounds = array<i64: 8, 128>}, {pipeline_mode = #tpu.pipeline_mode<synchronous>, transform_indices = @transform_5, window_bounds = array<i64: 8, 128>}]} {
    %c0_i32 = arith.constant 0 : i32
    %0 = arith.cmpi eq, %arg0, %c0_i32 : i32
    %1 = arith.extui %0 : i1 to i32
    %c0_i32_0 = arith.constant 0 : i32
    %2 = arith.cmpi ne, %1, %c0_i32_0 : i32
    scf.if %2 {
      %cst_28 = arith.constant 0.000000e+00 : f32
      %61 = vector.broadcast %cst_28 : f32 to vector<8x128xf32>
      %c0_29 = arith.constant 0 : index
      %c0_30 = arith.constant 0 : index
      %62 = vector.load %arg5[%c0_29, %c0_30] : memref<8x128xf32, #tpu.memory_space<vmem>>, vector<8x128xf32>
      tpu.vector_store %arg5[%c0_29, %c0_30], %61 {strides = array<i32>} : memref<8x128xf32, #tpu.memory_space<vmem>>, vector<8x128xf32>,
      %cst_31 = arith.constant 0.000000e+00 : f32
      %63 = vector.broadcast %cst_31 : f32 to vector<8x128xf32>
      %c0_32 = arith.constant 0 : index
      %c0_33 = arith.constant 0 : index
      %64 = vector.load %arg6[%c0_32, %c0_33] : memref<8x128xf32, #tpu.memory_space<vmem>>, vector<8x128xf32>
      tpu.vector_store %arg6[%c0_32, %c0_33], %63 {strides = array<i32>} : memref<8x128xf32, #tpu.memory_space<vmem>>, vector<8x128xf32>,
    } else {
    }
    %c0 = arith.constant 0 : index
    %c0_1 = arith.constant 0 : index
    %3 = vector.load %arg5[%c0, %c0_1] : memref<8x128xf32, #tpu.memory_space<vmem>>, vector<8x128xf32>
    %c0_2 = arith.constant 0 : index
    %c0_3 = arith.constant 0 : index
    %4 = vector.load %arg6[%c0_2, %c0_3] : memref<8x128xf32, #tpu.memory_space<vmem>>, vector<8x128xf32>
    %5 = tpu.concatenate %3, %4 in 1 : vector<8x128xf32>, vector<8x128xf32> -> vector<8x256xf32>
    %c0_4 = arith.constant 0 : index
    %c0_5 = arith.constant 0 : index
    %c0_6 = arith.constant 0 : index
    %c0_7 = arith.constant 0 : index
    %6 = vector.load %arg1[%c0_4, %c0_5, %c0_6, %c0_7] : memref<1x2x8x8xf32, #tpu.memory_space<vmem>>, vector<1x1x8x8xf32>
    %7 = vector.shape_cast %6 : vector<1x1x8x8xf32> to vector<8x8xf32>
    %cst = arith.constant dense<0.000000e+00> : vector<8x256xf32>
    %8 = tpu.matmul %7, %5, %cst {dimension_numbers = #tpu.dot_dimension_numbers<[1], [0], [0], [1], [0, 0, 1, 1], [], []>} : vector<8x8xf32>, vector<8x256xf32>, vector<8x256xf32> -> vector<8x256xf32>
    %c0_8 = arith.constant 0 : index
    %c1 = arith.constant 1 : index
    %c0_9 = arith.constant 0 : index
    %c0_10 = arith.constant 0 : index
    %9 = vector.load %arg1[%c0_8, %c1, %c0_9, %c0_10] : memref<1x2x8x8xf32, #tpu.memory_space<vmem>>, vector<1x1x8x8xf32>
    %10 = vector.shape_cast %9 : vector<1x1x8x8xf32> to vector<8x8xf32>
    %cst_11 = arith.constant dense<0.000000e+00> : vector<8x256xf32>
    %11 = tpu.matmul %10, %5, %cst_11 {dimension_numbers = #tpu.dot_dimension_numbers<[1], [0], [0], [1], [0, 0, 1, 1], [], []>} : vector<8x8xf32>, vector<8x256xf32>, vector<8x256xf32> -> vector<8x256xf32>
    %12 = vector.extract_strided_slice %8 {offsets = [0, 0], sizes = [8, 128], strides = [1, 1]} : vector<8x256xf32> to vector<8x128xf32>
    %13 = vector.extract_strided_slice %8 {offsets = [0, 128], sizes = [8, 128], strides = [1, 1]} : vector<8x256xf32> to vector<8x128xf32>
    %14 = vector.extract_strided_slice %11 {offsets = [0, 0], sizes = [8, 128], strides = [1, 1]} : vector<8x256xf32> to vector<8x128xf32>
    %15 = vector.extract_strided_slice %11 {offsets = [0, 128], sizes = [8, 128], strides = [1, 1]} : vector<8x256xf32> to vector<8x128xf32>
    %c0_12 = arith.constant 0 : index
    %c0_13 = arith.constant 0 : index
    %c0_14 = arith.constant 0 : index
    %16 = vector.load %arg2[%c0_12, %c0_13, %c0_14] : memref<1x8x128xbf16, #tpu.memory_space<vmem>>, vector<1x8x128xbf16>
    %17 = vector.shape_cast %16 : vector<1x8x128xbf16> to vector<8x128xbf16>
    %18 = arith.truncf %12 : vector<8x128xf32> to vector<8x128xbf16>
    %19 = arith.truncf %14 : vector<8x128xf32> to vector<8x128xbf16>
    %20 = tpu.concatenate %17, %18, %19 in 1 : vector<8x128xbf16>, vector<8x128xbf16>, vector<8x128xbf16> -> vector<8x384xbf16>
    %c0_15 = arith.constant 0 : index
    %c0_16 = arith.constant 0 : index
    %21 = vector.load %arg3[%c0_15, %c0_16] : memref<384x640xbf16, #tpu.memory_space<vmem>>, vector<384x640xbf16>
    %cst_17 = arith.constant dense<0.000000e+00> : vector<8x640xf32>
    %22 = tpu.matmul %20, %21, %cst_17 {dimension_numbers = #tpu.dot_dimension_numbers<[1], [0], [0], [1], [0, 0, 1, 1], [], []>} : vector<8x384xbf16>, vector<384x640xbf16>, vector<8x640xf32> -> vector<8x640xf32>
    %c0_18 = arith.constant 0 : index
    %c0_19 = arith.constant 0 : index
    %23 = vector.load %arg4[%c0_18, %c0_19] : memref<1x640xf32, #tpu.memory_space<vmem>>, vector<1x640xf32>
    %24 = vector.broadcast %23 : vector<1x640xf32> to vector<8x640xf32>
    %25 = arith.addf %22, %24 : vector<8x640xf32>
    %26 = vector.extract_strided_slice %25 {offsets = [0, 0], sizes = [8, 128], strides = [1, 1]} : vector<8x640xf32> to vector<8x128xf32>
    %27 = arith.negf %26 : vector<8x128xf32>
    %28 = math.exp %27 : vector<8x128xf32>
    %cst_20 = arith.constant 1.000000e+00 : f32
    %29 = vector.broadcast %cst_20 : f32 to vector<8x128xf32>
    %30 = arith.addf %29, %28 : vector<8x128xf32>
    %31 = arith.divf %29, %30 : vector<8x128xf32>
    %32 = vector.extract_strided_slice %25 {offsets = [0, 128], sizes = [8, 128], strides = [1, 1]} : vector<8x640xf32> to vector<8x128xf32>
    %33 = arith.negf %32 : vector<8x128xf32>
    %34 = math.exp %33 : vector<8x128xf32>
    %cst_21 = arith.constant 1.000000e+00 : f32
    %35 = vector.broadcast %cst_21 : f32 to vector<8x128xf32>
    %36 = arith.addf %35, %34 : vector<8x128xf32>
    %37 = arith.divf %35, %36 : vector<8x128xf32>
    %38 = vector.extract_strided_slice %25 {offsets = [0, 256], sizes = [8, 128], strides = [1, 1]} : vector<8x640xf32> to vector<8x128xf32>
    %39 = arith.negf %38 : vector<8x128xf32>
    %40 = math.exp %39 : vector<8x128xf32>
    %cst_22 = arith.constant 1.000000e+00 : f32
    %41 = vector.broadcast %cst_22 : f32 to vector<8x128xf32>
    %42 = arith.addf %41, %40 : vector<8x128xf32>
    %43 = arith.divf %41, %42 : vector<8x128xf32>
    %44 = vector.extract_strided_slice %25 {offsets = [0, 384], sizes = [8, 128], strides = [1, 1]} : vector<8x640xf32> to vector<8x128xf32>
    %45 = arith.negf %44 : vector<8x128xf32>
    %46 = math.exp %45 : vector<8x128xf32>
    %cst_23 = arith.constant 1.000000e+00 : f32
    %47 = vector.broadcast %cst_23 : f32 to vector<8x128xf32>
    %48 = arith.addf %47, %46 : vector<8x128xf32>
    %49 = arith.divf %47, %48 : vector<8x128xf32>
    %50 = vector.extract_strided_slice %25 {offsets = [0, 512], sizes = [8, 128], strides = [1, 1]} : vector<8x640xf32> to vector<8x128xf32>
    %51 = math.tanh %50 : vector<8x128xf32>
    %52 = arith.mulf %31, %51 : vector<8x128xf32>
    %53 = arith.mulf %37, %13 : vector<8x128xf32>
    %54 = arith.addf %52, %53 : vector<8x128xf32>
    %55 = arith.mulf %43, %15 : vector<8x128xf32>
    %56 = arith.addf %54, %55 : vector<8x128xf32>
    %57 = math.tanh %56 : vector<8x128xf32>
    %58 = arith.mulf %49, %57 : vector<8x128xf32>
    %c0_24 = arith.constant 0 : index
    %c0_25 = arith.constant 0 : index
    %59 = vector.load %arg5[%c0_24, %c0_25] : memref<8x128xf32, #tpu.memory_space<vmem>>, vector<8x128xf32>
    tpu.vector_store %arg5[%c0_24, %c0_25], %58 {strides = array<i32>} : memref<8x128xf32, #tpu.memory_space<vmem>>, vector<8x128xf32>,
    %c0_26 = arith.constant 0 : index
    %c0_27 = arith.constant 0 : index
    %60 = vector.load %arg6[%c0_26, %c0_27] : memref<8x128xf32, #tpu.memory_space<vmem>>, vector<8x128xf32>
    tpu.vector_store %arg6[%c0_26, %c0_27], %56 {strides = array<i32>} : memref<8x128xf32, #tpu.memory_space<vmem>>, vector<8x128xf32>,
    return
  }
  func.func @transform_0(%arg0: i32) -> (i32, i32, i32, i32) {
    %c0_i32 = arith.constant 0 : i32
    %c0_i32_0 = arith.constant 0 : i32
    %c0_i32_1 = arith.constant 0 : i32
    %c0_i32_2 = arith.constant 0 : i32
    return %arg0, %c0_i32, %c0_i32_0, %c0_i32_1 : i32, i32, i32, i32
  }
  func.func @transform_1(%arg0: i32) -> (i32, i32, i32) {
    %c0_i32 = arith.constant 0 : i32
    %c0_i32_0 = arith.constant 0 : i32
    %c0_i32_1 = arith.constant 0 : i32
    return %arg0, %c0_i32, %c0_i32_0 : i32, i32, i32
  }
  func.func @transform_2(%arg0: i32) -> (i32, i32) {
    %c0_i32 = arith.constant 0 : i32
    %c0_i32_0 = arith.constant 0 : i32
    %c0_i32_1 = arith.constant 0 : i32
    return %c0_i32, %c0_i32_0 : i32, i32
  }
  func.func @transform_3(%arg0: i32) -> (i32, i32) {
    %c0_i32 = arith.constant 0 : i32
    %c0_i32_0 = arith.constant 0 : i32
    %c0_i32_1 = arith.constant 0 : i32
    return %c0_i32, %c0_i32_0 : i32, i32
  }
  func.func @transform_4(%arg0: i32) -> (i32, i32) {
    %c0_i32 = arith.constant 0 : i32
    %c0_i32_0 = arith.constant 0 : i32
    %c0_i32_1 = arith.constant 0 : i32
    return %c0_i32, %c0_i32_0 : i32, i32
  }
  func.func @transform_5(%arg0: i32) -> (i32, i32) {
    %c0_i32 = arith.constant 0 : i32
    %c0_i32_0 = arith.constant 0 : i32
    %c0_i32_1 = arith.constant 0 : i32
    return %c0_i32, %c0_i32_0 : i32, i32
  }
}

</mosaic_0001>

<bundles_post_ra>
// kernel: _hybrid_tree_lstm_fused.1
= control target key start
LH: loop header
LB: loop body
LE: loop exit
PB: predicated region body
PF: predicated region fallthrough
CT: control target
= control target key end

     0   :  { %11 = vsyncpa [#allocation3], 0  ;;  %s2292_s0 = inlined_call_operand.vmem [shape: f32[4,2,8,8], index: 0, kind: input, shape index: {}]   ;;  %s2293_s1 = inlined_call_operand.vmem [shape: bf16[4,8,128], index: 1, kind: input, shape index: {}]   ;;  %s2294_s2 = inlined_call_operand.hbm [shape: bf16[384,640], index: 2, kind: input, shape index: {}]   ;;  %s2295_s3 = inlined_call_operand.vmem [shape: f32[1,640], index: 3, kind: input, shape index: {}]   ;;  %s2296_s4 = inlined_call_operand.hbm [shape: f32[8,128], index: 4, kind: output, shape index: {0}]   ;;  %s2297_s5 = inlined_call_operand.hbm [shape: f32[8,128], index: 5, kind: output, shape index: {1}]  }
   0x1   :  { %12 = vsyncpa [#allocation4], 0 }
   0x2   :  { %13 = vsyncpa [#allocation7], 0  ;;  %s2144_s18 = smov 0  }
   0x3 LB: > { %s2150_s19 = sadd.s32 4294967295, %s2103_s18   ;;  %p1572_p0 = scmp.ge.s32.totalorder %s2103_s18, 1  ;;  %s2103_s18 = sphi %s2144_s18, %s19_s18  }
   0x4   : > { %p160_p1 = scmp.lt.s32.totalorder %s2103_s18, 5  ;;  %s2105_s20 = smov [#allocation2]  }
   0x5   : > { %s172_s21 = sshll.u32 %s2105_s20, 4  ;;  %p2298_p4 = scmp.eq.s32.totalorder %s2150_s19, 0  ;;  %s173_s21 = int_to_ptr.vmem [resolvable:$true] %s172_s21 }
   0x6   : > { %p2155_p3 = pnand %p1572_p0, %p160_p1  ;;  %s2005_s26 = scalar_lea.hbm %s2294_s2, 15360 }
   0x7   : > { %p2006_p7 = scmp.ne.s32.totalorder %s2294_s2, %s2005_s26  ;;  %p2012_p11 = scmp.lt.u32.totalorder %s2005_s26, %s2294_s2 }
   0x8   : > { %s2300_s22 = scalar_select %p2155_p3, 1, 0 }
   0x9   : > { %p1790_p5 = pneg %p2155_p3 }
   0xb   : > { %p2164_p6 = pnand %p2298_p4, %p1790_p5 }
   0xd   : > { %p2007_p8 = pneg %p2164_p6 }
   0xf   : > { %p2008_p9 = pnand %p2007_p8, %p2006_p7 }
  0x11   : > { %p2009_p10 = pneg %p2008_p9 }
  0x13   : > { %p2014_p12 = pnand %p2012_p11, %p2009_p10 }
  0x15   : > { %2017 = shalt.err (!%p2014_p12)
}
  0x16   : > { %s2018_s6 = scalar_lea.vmem %s173_s21, 15360  ;;  %p2026_p5 = scmp.lt.s32.totalorder %s173_s21, %s173_s21 }
  0x17   : > { %p2019_p13 = scmp.ne.s32.totalorder %s173_s21, %s2018_s6  ;;  %p2027_p2 = scmp.lt.s32.totalorder %s2018_s6, %s2018_s6 }
  0x19   : > { %p2021_p0 = pnand %p2019_p13, %p2007_p8  ;;  %p2028_p4 = por %p2027_p2, %p2026_p5 }
  0x1b   : > { %p2022_p1 = pneg %p2021_p0 }
  0x1d   : > { %p2029_p3 = pnand %p2028_p4, %p2022_p1 }
  0x1f   : > { %2032 = shalt.err (!%p2029_p3)
}
  0x20   : > { %s2106_s7 = smov 320   ;;  %s2107_s8 = smov 20  }
  0x21   : > { %1793 = dma.hbm_to_vmem [thread:$0]  (!%p2164_p6), %s2294_s2, 15360, %s173_s21, [#allocation3], %s2106_s7, %s2106_s7, %s2107_s8  }
  0x22   : > { %p2302_p7 = scmp.ne.s32.totalorder %s2300_s22, 0 }
  0x23   : > { %p2303_p9 = scmp.eq.s32.totalorder (!%p2302_p7), %s2150_s19, 0 }
  0x24   : > { %206 = sbr.rel (%p2302_p7) target bundleno = 612 (0x264), region = 36 }
  0x2b   : > { %2090 = dma.done.wait (%p2303_p9), [#allocation3], 15360   ;;  %p2304_p8 = pmov %p2303_p9 }
  0x2c   : > { %p233_p2 = scmp.lt.s32.totalorder %s2150_s19, 3  ;;  %p2305_p3 = scmp.ne.s32.totalorder %s2150_s19, 0 }
  0x2d   : > { %2092 = vsyncadd (%p2304_p8), [#allocation3], 4294951936  ;;  %v2108_v0 = vmov (!%p2305_p3), 0.0  }
  0x2e   : > { %s234_s11 = scalar_select %p233_p2, %s2150_s19, 3 }
  0x2f   : > { %246 = sbr.rel (%p2305_p3) target bundleno = 54 (0x36), region = 44  ;;  %247 = vst [vmem:[#allocation5] sm:$0xff] (!%p2305_p3), %v2108_v0  ;;  %248 = vst [vmem:[#allocation6] sm:$0xff] (!%p2305_p3), %v2108_v0 }
  0x30   : > { %s1714_s12 = sshll.u32 %s234_s11, 4  ;;  %s1579_s13 = sshll.u32 %s234_s11, 2 }
  0x31   : > { %s237_s16 = scalar_lea.vmem %s2292_s0, %s1714_s12  ;;  %s2198_s21 = scalar_lea.vmem %s2293_s1, %s1579_s13 }
  0x36 PF: > { %v250_v1 = vld [vmem:[#allocation6] sm:$0xff]  ;;  %v249_v2 = vld [vmem:[#allocation5] sm:$0xff]  ;;  %vm252_vm0 = vcmask 64512   ;;  %v2109_v4 = vmov 0.0   ;;  %v1834_v15 = vld [vmem:[#allocation2 + $0x5c] ss:$20 sps:$4 sm:$0xff]  }
  0x37   : > { %v251_v3 = vld [vmem:[%s237_s16] sm:$0xff]  ;;  %256 = vmatprep.subr.mxu0 %v250_v1  ;;  %320 = vmatprep.mubr.f32.mxu0 %v2109_v4  ;;  %v1582_v5 = vld [vmem:[%s237_s16 + $0x8] sm:$0xff]  ;;  %v1837_v18 = vld [vmem:[#allocation2 + $0x7c] ss:$20 sps:$4 sm:$0xff]   ;;  %vm2111_vm1 = vmmov 0   ;;  %s2112_s24 = smov [#allocation6]  }
  0x38   : > { %257 = vmatpush1.msra.mxu0 %v249_v2  ;;  %332 = vmatprep.subr.mxu1 %v250_v1  ;;  %v1817_v6 = vld [vmem:[#allocation2] ss:$20 sps:$4 sm:$0xff]   ;;  %v1819_v7 = vld [vmem:[#allocation2 + $0x4] ss:$20 sps:$4 sm:$0xff]   ;;  %v1820_v8 = vld [vmem:[#allocation2 + $0x8] ss:$20 sps:$4 sm:$0xff]  }
  0x39   : > { %1581 = vmatmul.mubr.msk.f32.vlgmr.msra.gmra.mrb[0].mxu0 %vm252_vm0, %v251_v3  ;;  %333 = vmatpush1.msra.mxu1 %v249_v2  ;;  %v1822_v9 = vld [vmem:[#allocation2 + $0xc] ss:$20 sps:$4 sm:$0xff]   ;;  %v1823_v10 = vld [vmem:[#allocation2 + $0x28] ss:$20 sps:$4 sm:$0xff]   ;;  %v1826_v12 = vld [vmem:[#allocation2 + $0x30] ss:$20 sps:$4 sm:$0xff]  }
  0x3a   : > { %396 = vmatprep.mubr.f32.mxu1 %v2109_v4  ;;  %1201 = vmatprep.subr.bf16.mxu0 %v1819_v7  ;;  %v1825_v11 = vld [vmem:[#allocation2 + $0x2c] ss:$20 sps:$4 sm:$0xff]   ;;  %v1828_v13 = vld [vmem:[#allocation2 + $0x34] ss:$20 sps:$4 sm:$0xff]   ;;  %v1829_v16 = vld [vmem:[#allocation2 + $0x50] ss:$20 sps:$4 sm:$0xff]  }
  0x3b   : > { %1583 = vmatmul.mubr.msk.f32.vlgmr.msra.gmra.mrb[0].mxu1 %vm252_vm0, %v1582_v5  ;;  %1283 = vmatprep.subr.bf16.mxu1 %v1822_v9  ;;  %v1831_v14 = vld [vmem:[#allocation2 + $0x54] ss:$20 sps:$4 sm:$0xff]   ;;  %v1832_v17 = vld [vmem:[#allocation2 + $0x58] ss:$20 sps:$4 sm:$0xff]   ;;  %v1850_v29 = vld [vmem:[#allocation2 + $0xd0] ss:$20 sps:$4 sm:$0xff]  }
  0x3c   : > { %1202 = vmatpush1.bf16.msra.mxu0 %v1817_v6  ;;  %1284 = vmatpush1.bf16.msra.mxu1 %v1820_v8  ;;  %v1840_v19 = vld [vmem:[#allocation2 + $0x84] ss:$20 sps:$4 sm:$0xff]   ;;  %v1838_v21 = vld [vmem:[#allocation2 + $0x80] ss:$20 sps:$4 sm:$0xff]   ;;  %v1844_v25 = vld [vmem:[#allocation2 + $0xa8] ss:$20 sps:$4 sm:$0xff]  }
  0x3d   : > { %1203 = vmatprep.subr.bf16.mxu0 %v1825_v11  ;;  %1285 = vmatprep.subr.bf16.mxu1 %v1828_v13  ;;  %v1835_v20 = vld [vmem:[#allocation2 + $0x78] ss:$20 sps:$4 sm:$0xff]   ;;  %v1841_v24 = vld [vmem:[#allocation2 + $0xa0] ss:$20 sps:$4 sm:$0xff]   ;;  %v1847_v28 = vld [vmem:[#allocation2 + $0xc8] ss:$20 sps:$4 sm:$0xff]  }
  0x3e   : > { %v1843_v22 = vld [vmem:[#allocation2 + $0xa4] ss:$20 sps:$4 sm:$0xff]   ;;  %v1846_v23 = vld [vmem:[#allocation2 + $0xac] ss:$20 sps:$4 sm:$0xff]   ;;  %v1852_v27 = vld [vmem:[#allocation2 + $0xd4] ss:$20 sps:$4 sm:$0xff]  }
  0x3f   : > { %v1849_v26 = vld [vmem:[#allocation2 + $0xcc] ss:$20 sps:$4 sm:$0xff]   ;;  %v1855_v30 = vld [vmem:[#allocation2 + $0xf4] ss:$20 sps:$4 sm:$0xff]   ;;  %v1858_v31 = vld [vmem:[#allocation2 + $0xfc] ss:$20 sps:$4 sm:$0xff]  }
  0x40   : > { %1204 = vmatpush1.bf16.msra.mxu0 %v1823_v10  ;;  %1286 = vmatpush1.bf16.msra.mxu1 %v1826_v12  ;;  %v1853_v32 = vld [vmem:[#allocation2 + $0xf0] ss:$20 sps:$4 sm:$0xff]   ;;  %v1856_v33 = vld [vmem:[#allocation2 + $0xf8] ss:$20 sps:$4 sm:$0xff]   ;;  %v1862_v37 = vld [vmem:[#allocation2 + $0x120] ss:$20 sps:$4 sm:$0xff]  }
  0x41   : > { %1205 = vmatprep.subr.bf16.mxu0 %v1831_v14  ;;  %1287 = vmatprep.subr.bf16.mxu1 %v1834_v15  ;;  %v1861_v34 = vld [vmem:[#allocation2 + $0x11c] ss:$20 sps:$4 sm:$0xff]   ;;  %v1864_v35 = vld [vmem:[#allocation2 + $0x124] ss:$20 sps:$4 sm:$0xff]   ;;  %v1870_v39 = vld [vmem:[#allocation2 + $0x14c] ss:$20 sps:$4 sm:$0xff]  }
  0x42   : > { %v1859_v36 = vld [vmem:[#allocation2 + $0x118] ss:$20 sps:$4 sm:$0xff]   ;;  %v1865_v40 = vld [vmem:[#allocation2 + $0x140] ss:$20 sps:$4 sm:$0xff]   ;;  %v1868_v41 = vld [vmem:[#allocation2 + $0x148] ss:$20 sps:$4 sm:$0xff]  }
  0x43   : > { %v1867_v38 = vld [vmem:[#allocation2 + $0x144] ss:$20 sps:$4 sm:$0xff]   ;;  %v1873_v42 = vld [vmem:[#allocation2 + $0x16c] ss:$20 sps:$4 sm:$0xff]   ;;  %v1876_v43 = vld [vmem:[#allocation2 + $0x174] ss:$20 sps:$4 sm:$0xff]  }
  0x44   : > { %1206 = vmatpush1.bf16.msra.mxu0 %v1829_v16  ;;  %1288 = vmatpush1.bf16.msra.mxu1 %v1832_v17  ;;  %v1871_v44 = vld [vmem:[#allocation2 + $0x168] ss:$20 sps:$4 sm:$0xff]   ;;  %v1874_v45 = vld [vmem:[#allocation2 + $0x170] ss:$20 sps:$4 sm:$0xff]   ;;  %v1880_v49 = vld [vmem:[#allocation2 + $0x198] ss:$20 sps:$4 sm:$0xff]  }
  0x45   : > { %1207 = vmatprep.subr.bf16.mxu0 %v1837_v18  ;;  %1289 = vmatprep.subr.bf16.mxu1 %v1840_v19  ;;  %v1879_v46 = vld [vmem:[#allocation2 + $0x194] ss:$20 sps:$4 sm:$0xff]   ;;  %v1882_v47 = vld [vmem:[#allocation2 + $0x19c] ss:$20 sps:$4 sm:$0xff]   ;;  %v1888_v51 = vld [vmem:[#allocation2 + $0x1c4] ss:$20 sps:$4 sm:$0xff]  }
  0x46   : > { %v1877_v48 = vld [vmem:[#allocation2 + $0x190] ss:$20 sps:$4 sm:$0xff]   ;;  %v1883_v52 = vld [vmem:[#allocation2 + $0x1b8] ss:$20 sps:$4 sm:$0xff]   ;;  %v1886_v53 = vld [vmem:[#allocation2 + $0x1c0] ss:$20 sps:$4 sm:$0xff]  }
  0x47   : > { %v1885_v50 = vld [vmem:[#allocation2 + $0x1bc] ss:$20 sps:$4 sm:$0xff]   ;;  %v1891_v54 = vld [vmem:[#allocation2 + $0x1e4] ss:$20 sps:$4 sm:$0xff]   ;;  %v1894_v55 = vld [vmem:[#allocation2 + $0x1ec] ss:$20 sps:$4 sm:$0xff]  }
  0x48   : > { %1208 = vmatpush1.bf16.msra.mxu0 %v1835_v20  ;;  %1290 = vmatpush1.bf16.msra.mxu1 %v1838_v21  ;;  %v1889_v56 = vld [vmem:[#allocation2 + $0x1e0] ss:$20 sps:$4 sm:$0xff]   ;;  %v1892_v57 = vld [vmem:[#allocation2 + $0x1e8] ss:$20 sps:$4 sm:$0xff]   ;;  %v1898_v61 = vld [vmem:[#allocation2 + $0x210] ss:$20 sps:$4 sm:$0xff]  }
  0x49   : > { %1209 = vmatprep.subr.bf16.mxu0 %v1843_v22  ;;  %1291 = vmatprep.subr.bf16.mxu1 %v1846_v23  ;;  %v1897_v58 = vld [vmem:[#allocation2 + $0x20c] ss:$20 sps:$4 sm:$0xff]   ;;  %v1900_v59 = vld [vmem:[#allocation2 + $0x214] ss:$20 sps:$4 sm:$0xff]   ;;  %v1906_v63 = vld [vmem:[#allocation2 + $0x23c] ss:$20 sps:$4 sm:$0xff]  }
  0x4a   : > { %v1895_v60 = vld [vmem:[#allocation2 + $0x208] ss:$20 sps:$4 sm:$0xff]   ;;  %v1901_v0 = vld [vmem:[#allocation2 + $0x230] ss:$20 sps:$4 sm:$0xff]   ;;  %v1904_v1 = vld [vmem:[#allocation2 + $0x238] ss:$20 sps:$4 sm:$0xff]  }
  0x4b   : > { %v1903_v62 = vld [vmem:[#allocation2 + $0x234] ss:$20 sps:$4 sm:$0xff]   ;;  %v1909_v2 = vld [vmem:[#allocation2 + $0x25c] ss:$20 sps:$4 sm:$0xff]   ;;  %v1912_v3 = vld [vmem:[#allocation2 + $0x264] ss:$20 sps:$4 sm:$0xff]  }
  0x4c   : > { %1210 = vmatpush1.bf16.msra.mxu0 %v1841_v24  ;;  %1292 = vmatpush1.bf16.msra.mxu1 %v1844_v25  ;;  %v1907_v5 = vld [vmem:[#allocation2 + $0x258] ss:$20 sps:$4 sm:$0xff]   ;;  %v1910_v6 = vld [vmem:[#allocation2 + $0x260] ss:$20 sps:$4 sm:$0xff]   ;;  %v1916_v13 = vld [vmem:[#allocation2 + $0x288] ss:$20 sps:$4 sm:$0xff]  }
  0x4d   : > { %1211 = vmatprep.subr.bf16.mxu0 %v1849_v26  ;;  %1293 = vmatprep.subr.bf16.mxu1 %v1852_v27  ;;  %v1915_v7 = vld [vmem:[#allocation2 + $0x284] ss:$20 sps:$4 sm:$0xff]   ;;  %v1918_v8 = vld [vmem:[#allocation2 + $0x28c] ss:$20 sps:$4 sm:$0xff]   ;;  %v1924_v16 = vld [vmem:[#allocation2 + $0x2b4] ss:$20 sps:$4 sm:$0xff]  }
  0x4e   : > { %v1913_v10 = vld [vmem:[#allocation2 + $0x280] ss:$20 sps:$4 sm:$0xff]   ;;  %v1919_v19 = vld [vmem:[#allocation2 + $0x2a8] ss:$20 sps:$4 sm:$0xff]   ;;  %v1922_v20 = vld [vmem:[#allocation2 + $0x2b0] ss:$20 sps:$4 sm:$0xff]  }
  0x4f   : > { %v2211_v14 = vld [vmem:[%s2198_s21] sm:$0xf]  ;;  %v1927_v21 = vld [vmem:[#allocation2 + $0x2d4] ss:$20 sps:$4 sm:$0xff]   ;;  %v1930_v22 = vld [vmem:[#allocation2 + $0x2dc] ss:$20 sps:$4 sm:$0xff]  }
  0x50   : > { %1212 = vmatpush1.bf16.msra.mxu0 %v1847_v28  ;;  %1294 = vmatpush1.bf16.msra.mxu1 %v1850_v29  ;;  %v1921_v15 = vld [vmem:[#allocation2 + $0x2ac] ss:$20 sps:$4 sm:$0xff]   ;;  %v2110_v23 = vmov 0   ;;  %v1925_v24 = vld [vmem:[#allocation2 + $0x2d0] ss:$20 sps:$4 sm:$0xff]   ;;  %s1497_s25 = sshll.u32 %s2112_s24, 4  ;;  %s1498_s25 = int_to_ptr.vmem [resolvable:$true] %s1497_s25 }
  0x51   : > { %1213 = vmatprep.subr.bf16.mxu0 %v1855_v30  ;;  %1295 = vmatprep.subr.bf16.mxu1 %v1858_v31  ;;  %v1928_v25 = vld [vmem:[#allocation2 + $0x2d8] ss:$20 sps:$4 sm:$0xff]   ;;  %v1933_v26 = vld [vmem:[#allocation2 + $0x2fc] ss:$20 sps:$4 sm:$0xff]   ;;  %v1934_v29 = vld [vmem:[#allocation2 + $0x300] ss:$20 sps:$4 sm:$0xff]   ;;  %p2040_p12 = scmp.lt.s32.totalorder %s1498_s25, %s1498_s25 }
  0x52   : > { %v1936_v27 = vld [vmem:[#allocation2 + $0x304] ss:$20 sps:$4 sm:$0xff]   ;;  %v1942_v31 = vld [vmem:[#allocation2 + $0x32c] ss:$20 sps:$4 sm:$0xff]   ;;  %p1796_p4 = scmp.eq.s32.totalorder %s2150_s19, 3  ;;  %s2033_s26 = scalar_lea.vmem %s1498_s25, 128 }
  0x53   : > { %v1931_v28 = vld [vmem:[#allocation2 + $0x2f8] ss:$20 sps:$4 sm:$0xff]   ;;  %p2034_p6 = scmp.ne.s32.totalorder %s1498_s25, %s2033_s26  ;;  %p2041_p13 = scmp.lt.s32.totalorder %s2033_s26, %s2033_s26 }
  0x54   : > { %1214 = vmatpush1.bf16.msra.mxu0 %v1853_v32  ;;  %1296 = vmatpush1.bf16.msra.mxu1 %v1856_v33  ;;  %v1939_v30 = vld [vmem:[#allocation2 + $0x324] ss:$20 sps:$4 sm:$0xff]   ;;  %v1937_v32 = vld [vmem:[#allocation2 + $0x320] ss:$20 sps:$4 sm:$0xff]   ;;  %v1940_v33 = vld [vmem:[#allocation2 + $0x328] ss:$20 sps:$4 sm:$0xff]  }
  0x55   : > { %1215 = vmatprep.subr.bf16.mxu0 %v1861_v34  ;;  %1297 = vmatprep.subr.bf16.mxu1 %v1864_v35  ;;  %v1945_v34 = vld [vmem:[#allocation2 + $0x34c] ss:$20 sps:$4 sm:$0xff]   ;;  %v1948_v35 = vld [vmem:[#allocation2 + $0x354] ss:$20 sps:$4 sm:$0xff]   ;;  %p2035_p10 = pnand %p2034_p6, %p1796_p4  ;;  %p2042_p0 = por %p2041_p13, %p2040_p12 }
  0x57   : > { %p2036_p11 = pneg %p2035_p10 }
  0x58   : > { %1216 = vmatpush1.bf16.msra.mxu0 %v1859_v36  ;;  %1298 = vmatpush1.bf16.msra.mxu1 %v1862_v37  ;;  %v1943_v36 = vld [vmem:[#allocation2 + $0x348] ss:$20 sps:$4 sm:$0xff]   ;;  %v1946_v37 = vld [vmem:[#allocation2 + $0x350] ss:$20 sps:$4 sm:$0xff]  }
  0x59   : > { %1217 = vmatprep.subr.bf16.mxu0 %v1867_v38  ;;  %1299 = vmatprep.subr.bf16.mxu1 %v1870_v39  ;;  %v1951_v38 = vld [vmem:[#allocation2 + $0x374] ss:$20 sps:$4 sm:$0xff]   ;;  %v1954_v39 = vld [vmem:[#allocation2 + $0x37c] ss:$20 sps:$4 sm:$0xff]   ;;  %p2043_p1 = pnand %p2042_p0, %p2036_p11 }
  0x5c   : > { %1218 = vmatpush1.bf16.msra.mxu0 %v1865_v40  ;;  %1300 = vmatpush1.bf16.msra.mxu1 %v1868_v41  ;;  %v1949_v40 = vld [vmem:[#allocation2 + $0x370] ss:$20 sps:$4 sm:$0xff]   ;;  %v1952_v41 = vld [vmem:[#allocation2 + $0x378] ss:$20 sps:$4 sm:$0xff]  }
  0x5d   : > { %1219 = vmatprep.subr.bf16.mxu0 %v1873_v42  ;;  %1301 = vmatprep.subr.bf16.mxu1 %v1876_v43  ;;  %v1957_v42 = vld [vmem:[#allocation2 + $0x39c] ss:$20 sps:$4 sm:$0xff]   ;;  %v1960_v43 = vld [vmem:[#allocation2 + $0x3a4] ss:$20 sps:$4 sm:$0xff]  }
  0x60   : > { %1220 = vmatpush1.bf16.msra.mxu0 %v1871_v44  ;;  %1302 = vmatpush1.bf16.msra.mxu1 %v1874_v45  ;;  %v1955_v44 = vld [vmem:[#allocation2 + $0x398] ss:$20 sps:$4 sm:$0xff]   ;;  %v1958_v45 = vld [vmem:[#allocation2 + $0x3a0] ss:$20 sps:$4 sm:$0xff]  }
  0x61   : > { %1221 = vmatprep.subr.bf16.mxu0 %v1879_v46  ;;  %1303 = vmatprep.subr.bf16.mxu1 %v1882_v47  ;;  %v1961_v46 = vld [vmem:[#allocation2 + $0x150] ss:$20 sps:$4 sm:$0xff]  }
  0x64   : > { %1222 = vmatpush1.bf16.msra.mxu0 %v1877_v48  ;;  %1304 = vmatpush1.bf16.msra.mxu1 %v1880_v49  ;;  %v1962_v48 = vld [vmem:[#allocation2 + $0x10] ss:$20 sps:$4 sm:$0xff]  }
  0x65   : > { %1223 = vmatprep.subr.bf16.mxu0 %v1885_v50  ;;  %1305 = vmatprep.subr.bf16.mxu1 %v1888_v51  ;;  %v1963_v49 = vld [vmem:[#allocation2 + $0x290] ss:$20 sps:$4 sm:$0xff]   ;;  %v1964_v50 = vld [vmem:[#allocation2 + $0x178] ss:$20 sps:$4 sm:$0xff]  }
  0x66   : > { %v1965_v51 = vld [vmem:[#allocation2 + $0x38] ss:$20 sps:$4 sm:$0xff]  }
  0x68   : > { %1224 = vmatpush1.bf16.msra.mxu0 %v1883_v52  ;;  %1306 = vmatpush1.bf16.msra.mxu1 %v1886_v53  ;;  %v1966_v52 = vld [vmem:[#allocation2 + $0x2b8] ss:$20 sps:$4 sm:$0xff]   ;;  %v1967_v53 = vld [vmem:[#allocation2 + $0x1a0] ss:$20 sps:$4 sm:$0xff]  }
  0x69   : > { %1225 = vmatprep.subr.bf16.mxu0 %v1891_v54  ;;  %1307 = vmatprep.subr.bf16.mxu1 %v1894_v55  ;;  %v1968_v54 = vld [vmem:[#allocation2 + $0x60] ss:$20 sps:$4 sm:$0xff]  }
  0x6a   : > { %v1969_v55 = vld [vmem:[#allocation2 + $0x2e0] ss:$20 sps:$4 sm:$0xff]  }
  0x6c   : > { %1226 = vmatpush1.bf16.msra.mxu0 %v1889_v56  ;;  %1308 = vmatpush1.bf16.msra.mxu1 %v1892_v57  ;;  %v1970_v56 = vld [vmem:[#allocation2 + $0x1c8] ss:$20 sps:$4 sm:$0xff]  }
  0x6d   : > { %1227 = vmatprep.subr.bf16.mxu0 %v1897_v58  ;;  %1309 = vmatprep.subr.bf16.mxu1 %v1900_v59  ;;  %v1971_v57 = vld [vmem:[#allocation2 + $0x88] ss:$20 sps:$4 sm:$0xff]   ;;  %v1973_v59 = vld [vmem:[#allocation2 + $0x1f0] ss:$20 sps:$4 sm:$0xff]  }
  0x6e   : > { %v1972_v58 = vld [vmem:[#allocation2 + $0x308] ss:$20 sps:$4 sm:$0xff]  }
  0x70   : > { %1228 = vmatpush1.bf16.msra.mxu0 %v1895_v60  ;;  %1310 = vmatpush1.bf16.msra.mxu1 %v1898_v61  ;;  %v1974_v60 = vld [vmem:[#allocation2 + $0xb0] ss:$20 sps:$4 sm:$0xff]  }
  0x71   : > { %1229 = vmatprep.subr.bf16.mxu0 %v1903_v62  ;;  %1311 = vmatprep.subr.bf16.mxu1 %v1906_v63  ;;  %v1975_v61 = vld [vmem:[#allocation2 + $0x330] ss:$20 sps:$4 sm:$0xff]   ;;  %v1976_v62 = vld [vmem:[#allocation2 + $0x218] ss:$20 sps:$4 sm:$0xff]  }
  0x72   : > { %v1977_v63 = vld [vmem:[#allocation2 + $0xd8] ss:$20 sps:$4 sm:$0xff]  }
  0x74   : > { %1230 = vmatpush1.bf16.msra.mxu0 %v1901_v0  ;;  %1312 = vmatpush1.bf16.msra.mxu1 %v1904_v1  ;;  %v1978_v0 = vld [vmem:[#allocation2 + $0x358] ss:$20 sps:$4 sm:$0xff]   ;;  %v1979_v1 = vld [vmem:[#allocation2 + $0x240] ss:$20 sps:$4 sm:$0xff]  }
  0x75   : > { %1231 = vmatprep.subr.bf16.mxu0 %v1909_v2  ;;  %1313 = vmatprep.subr.bf16.mxu1 %v1912_v3  ;;  %v1980_v2 = vld [vmem:[#allocation2 + $0x100] ss:$20 sps:$4 sm:$0xff]  }
  0x76   : > { %v1981_v3 = vld [vmem:[#allocation2 + $0x380] ss:$20 sps:$4 sm:$0xff]  }
  0x78   : > { %1232 = vmatpush1.bf16.msra.mxu0 %v1907_v5  ;;  %1314 = vmatpush1.bf16.msra.mxu1 %v1910_v6  ;;  %v1982_v5 = vld [vmem:[#allocation2 + $0x268] ss:$20 sps:$4 sm:$0xff]  }
  0x79   : > { %1242 = vmatprep.subr.bf16.mxu0 %v1915_v7  ;;  %1324 = vmatprep.subr.bf16.mxu1 %v1918_v8  ;;  %v1983_v6 = vld [vmem:[#allocation2 + $0x128] ss:$20 sps:$4 sm:$0xff]   ;;  %v552_v8 = vlaneseq }
  0x7a   : > { %v1984_v7 = vld [vmem:[#allocation2 + $0x3a8] ss:$20 sps:$4 sm:$0xff]  }
 0x10c   : > { %v322_v9 = vpop.f32.mrb[0].mxu0 }
 0x10d   : > { %v2206_v11 = vpack.c.bf16 %v322_v9, %v322_v9  ;;  %v2208_v12 = vpop.f32.mrb[1].mxu0  ;;  %v553_v9 = vshrl.u32 %v552_v8, 7 }
 0x10e   : > { %v2213_v17 = vpop.f32.mrb[0].mxu1 }
 0x10f   : > { %1233 = vmatprep.mubr.bf16.mxu0 %v2206_v11  ;;  %1315 = vmatprep.mubr.bf16.mxu1 %v2206_v11  ;;  %v2217_v18 = vpop.f32.mrb[1].mxu1  ;;  %v2223_v47 = vpack.c.bf16 %v2213_v17, %v2213_v17 }
 0x110   : > { %1234 = vmatmul.mubr.bf16.vlgmr.msra.gmra.mrb[4].mxu0 %v2211_v14  ;;  %1316 = vmatmul.mubr.bf16.vlgmr.msra.gmra.mrb[4].mxu1 %v2211_v14 }
 0x111   : > { %1243 = vmatpush1.bf16.msra.mxu0 %v1913_v10  ;;  %1325 = vmatpush1.bf16.msra.mxu1 %v1916_v13  ;;  %v562_v10 = vsub.s32 2, %v553_v9  ;;  %v558_v13 = vsub.s32 1, %v553_v9 }
 0x112   : > { %1244 = vmatprep.subr.bf16.mxu0 %v1921_v15  ;;  %1326 = vmatprep.subr.bf16.mxu1 %v1924_v16 }
 0x113   : > { %1274 = vmatprep.mubr.bf16.mxu0 %v2110_v23  ;;  %1356 = vmatprep.mubr.bf16.mxu1 %v2110_v23 }
 0x115   : > { %1245 = vmatpush1.bf16.msra.mxu0 %v1919_v19  ;;  %1327 = vmatpush1.bf16.msra.mxu1 %v1922_v20 }
 0x116   : > { %1246 = vmatprep.subr.bf16.mxu0 %v1927_v21  ;;  %1328 = vmatprep.subr.bf16.mxu1 %v1930_v22 }
 0x119   : > { %1247 = vmatpush1.bf16.msra.mxu0 %v1925_v24  ;;  %1329 = vmatpush1.bf16.msra.mxu1 %v1928_v25 }
 0x11a   : > { %1248 = vmatprep.subr.bf16.mxu0 %v1933_v26  ;;  %1330 = vmatprep.subr.bf16.mxu1 %v1936_v27 }
 0x11d   : > { %1249 = vmatpush1.bf16.msra.mxu0 %v1931_v28  ;;  %1331 = vmatpush1.bf16.msra.mxu1 %v1934_v29  ;;  %v554_v28 = vsub.s32 0, %v553_v9 }
 0x11e   : > { %1250 = vmatprep.subr.bf16.mxu0 %v1939_v30  ;;  %1332 = vmatprep.subr.bf16.mxu1 %v1942_v31 }
 0x121   : > { %1251 = vmatpush1.bf16.msra.mxu0 %v1937_v32  ;;  %1333 = vmatpush1.bf16.msra.mxu1 %v1940_v33 }
 0x122   : > { %1252 = vmatprep.subr.bf16.mxu0 %v1945_v34  ;;  %1334 = vmatprep.subr.bf16.mxu1 %v1948_v35 }
 0x125   : > { %1253 = vmatpush1.bf16.msra.mxu0 %v1943_v36  ;;  %1335 = vmatpush1.bf16.msra.mxu1 %v1946_v37  ;;  %v566_v36 = vsub.s32 3, %v553_v9 }
 0x126   : > { %1254 = vmatprep.subr.bf16.mxu0 %v1951_v38  ;;  %1336 = vmatprep.subr.bf16.mxu1 %v1954_v39  ;;  %v570_v38 = vsub.s32 4, %v553_v9 }
 0x129   : > { %1255 = vmatpush1.bf16.msra.mxu0 %v1949_v40  ;;  %1337 = vmatpush1.bf16.msra.mxu1 %v1952_v41 }
 0x12a   : > { %1256 = vmatprep.subr.bf16.mxu0 %v1957_v42  ;;  %1338 = vmatprep.subr.bf16.mxu1 %v1960_v43 }
 0x12d   : > { %1257 = vmatpush1.bf16.msra.mxu0 %v1955_v44  ;;  %1339 = vmatpush1.bf16.msra.mxu1 %v1958_v45 }
 0x12e   : > { %1715 = vmatprep.subr.bf16.mxu0 %v1961_v46  ;;  %1746 = vmatprep.subr.bf16.mxu1 %v2109_v4 }
 0x130   : > { %1275 = vmatmul.mubr.bf16.vlgmr.msra.gmra.mrb[4].mxu0 %v2223_v47  ;;  %1357 = vmatmul.mubr.bf16.vlgmr.msra.gmra.mrb[4].mxu1 %v2223_v47 }
 0x131   : > { %1716 = vmatpush3.bf16.msra.mxu0 %v1962_v48  ;;  %1397 = vmatprep.mubr.bf16.mxu0 %v2206_v11  ;;  %v550_v11 = vld [vmem:[%s2295_s3] sm:$0x1f] }
 0x132   : > { %1747 = vmatpush3.bf16.msra.mxu1 %v1963_v49  ;;  %1717 = vmatprep.subr.bf16.mxu0 %v1964_v50  ;;  %v563_v15 = vrot.slane %v550_v11, %v562_v10  ;;  %v559_v16 = vrot.slane %v550_v11, %v558_v13  ;;  %v555_v29 = vrot.slane %v550_v11, %v554_v28 }
 0x133   : > { %1748 = vmatprep.subr.bf16.mxu1 %v2109_v4  ;;  %1762 = vmatprep.mubr.msk.bf16.mxu1 %vm2111_vm1, %v2109_v4  ;;  %v567_v37 = vrot.slane %v550_v11, %v566_v36  ;;  %v571_v46 = vrot.slane %v550_v11, %v570_v38 }
 0x135   : > { %1718 = vmatpush3.bf16.msra.mxu0 %v1965_v51 }
 0x136   : > { %1749 = vmatpush3.bf16.msra.mxu1 %v1966_v52  ;;  %1719 = vmatprep.subr.bf16.mxu0 %v1967_v53 }
 0x137   : > { %1750 = vmatprep.subr.bf16.mxu1 %v2109_v4 }
 0x139   : > { %1720 = vmatpush3.bf16.msra.mxu0 %v1968_v54 }
 0x13a   : > { %1751 = vmatpush3.bf16.msra.mxu1 %v1969_v55  ;;  %1721 = vmatprep.subr.bf16.mxu0 %v1970_v56 }
 0x13b   : > { %1752 = vmatprep.subr.bf16.mxu1 %v2109_v4 }
 0x13d   : > { %1722 = vmatpush3.bf16.msra.mxu0 %v1971_v57 }
 0x13e   : > { %1753 = vmatpush3.bf16.msra.mxu1 %v1972_v58  ;;  %1723 = vmatprep.subr.bf16.mxu0 %v1973_v59 }
 0x13f   : > { %1754 = vmatprep.subr.bf16.mxu1 %v2109_v4 }
 0x141   : > { %1724 = vmatpush3.bf16.msra.mxu0 %v1974_v60 }
 0x142   : > { %1755 = vmatpush3.bf16.msra.mxu1 %v1975_v61  ;;  %1725 = vmatprep.subr.bf16.mxu0 %v1976_v62 }
 0x143   : > { %1756 = vmatprep.subr.bf16.mxu1 %v2109_v4 }
 0x145   : > { %1726 = vmatpush3.bf16.msra.mxu0 %v1977_v63 }
 0x146   : > { %1757 = vmatpush3.bf16.msra.mxu1 %v1978_v0  ;;  %1727 = vmatprep.subr.bf16.mxu0 %v1979_v1 }
 0x147   : > { %1758 = vmatprep.subr.bf16.mxu1 %v2109_v4 }
 0x149   : > { %1728 = vmatpush3.bf16.msra.mxu0 %v1980_v2 }
 0x14a   : > { %1759 = vmatpush3.bf16.msra.mxu1 %v1981_v3  ;;  %1729 = vmatprep.subr.bf16.mxu0 %v1982_v5 }
 0x14b   : > { %1760 = vmatprep.subr.bf16.mxu1 %v2109_v4 }
 0x14d   : > { %1730 = vmatpush3.bf16.msra.mxu0 %v1983_v6 }
 0x14e   : > { %1761 = vmatpush3.bf16.msra.mxu1 %v1984_v7 }
 0x150   : > { %1398 = vmatmul.mubr.bf16.vlgmr.msra.gmra.mrb[8].mxu0 %v2211_v14 }
 0x151   : > { %1763 = vmatmul.mubr.bf16.vlgmr.msra.gmra.mrb[8].mxu1 %v2223_v47 }
 0x203   : > { %v1276_v17 = vpop.f32.mrb[4].mxu0  ;;  %v1358_v19 = vpop.f32.mrb[4].mxu1 }
 0x204   : > { %v1768_v20 = vadd.f32 %v1358_v19, %v563_v15  ;;  %v1278_v4 = vpop.f32.mrb[5].mxu0  ;;  %v1360_v21 = vpop.f32.mrb[5].mxu1  ;;  %v1766_v30 = vadd.f32 %v1276_v17, %v555_v29 }
 0x205   : > { %v1767_v22 = vadd.f32 %v1278_v4, %v559_v16  ;;  %v1280_v23 = vpop.f32.mrb[6].mxu0  ;;  %v1362_v14 = vpop.f32.mrb[6].mxu1  ;;  %v1769_v42 = vadd.f32 %v1360_v21, %v567_v37 }
 0x206   : > { %v1706_v24 = vmul.f32 -1.442695, %v1768_v20  ;;  %v1281_v25 = vpop.f32.mrb[7].mxu0  ;;  %v1363_v26 = vpop.f32.mrb[7].mxu1  ;;  %v1704_v34 = vmul.f32 -1.442695, %v1766_v30 }
 0x207   : > { %v1705_v27 = vmul.f32 -1.442695, %v1767_v22  ;;  %v1707_v49 = vmul.f32 -1.442695, %v1769_v42 }
 0x208   : > { %1985 = vpow2.f32 %v1706_v24 }
 0x209   : > { %1987 = vpow2.f32 %v1705_v27 }
 0x212   : > { %v1986_v31 = vpop.eup %1985 }
 0x213   : > { %v1988_v32 = vpop.eup %1987  ;;  %v1460_v33 = vadd.f32 1.0, %v1986_v31 }
 0x214   : > { %v1454_v35 = vadd.f32 1.0, %v1988_v32 }
 0x215   : > { %1989 = vrcp.f32 %v1460_v33 }
 0x216   : > { %1991 = vrcp.f32 %v1454_v35 }
 0x217   : > { %1993 = vpow2.f32 %v1704_v34 }
 0x218   : > { %1995 = vpow2.f32 %v1707_v49 }
 0x21f   : > { %v1990_v39 = vpop.eup %1989 }
 0x220   : > { %v1992_v40 = vpop.eup %1991  ;;  %v1473_v41 = vmul.f32 %v1990_v39, %v2217_v18 }
 0x221   : > { %v1471_v43 = vmul.f32 %v1992_v40, %v2208_v12  ;;  %v1994_v44 = vpop.eup %1993 }
 0x222   : > { %v1448_v53 = vadd.f32 1.0, %v1994_v44  ;;  %v1996_v12 = vpop.eup %1995 }
 0x223   : > { %v1731_v45 = vpop.f32.mrb[8].mxu0  ;;  %v1466_v61 = vadd.f32 1.0, %v1996_v12 }
 0x224   : > { %v1439_v47 = vpop.f32.mrb[8].mxu1  ;;  %v1732_v48 = vpop.f32.mrb[9].mxu0  ;;  %1997 = vrcp.f32 %v1448_v53 }
 0x225   : > { %v1733_v50 = vadd.f32 %v1732_v48, %v1731_v45  ;;  %v1764_v51 = vpop.f32.mrb[9].mxu1  ;;  %v1734_v52 = vpop.f32.mrb[10].mxu0 }
 0x226   : > { %v1442_v54 = vpop.f32.mrb[10].mxu1  ;;  %v1735_v55 = vpop.f32.mrb[11].mxu0 }
 0x227   : > { %v1400_v56 = vadd.f32 %v1733_v50, %v571_v46  ;;  %v1765_v57 = vpop.f32.mrb[11].mxu1 }
 0x229   : > { %v1440_v18 = vadd.f32 %v1439_v47, %v1400_v56 }
 0x22b   : > { %1999 = vtanh.f32 %v1440_v18 }
 0x22c   : > { %2001 = vrcp.f32 %v1466_v61 }
 0x22e   : > { %v1998_v58 = vpop.eup %1997 }
 0x235   : > { %v2000_v59 = vpop.eup %1999 }
 0x236   : > { %v1470_v60 = vmul.f32 %v2000_v59, %v1998_v58 }
 0x238   : > { %v1472_v62 = vadd.f32 %v1471_v43, %v1470_v60 }
 0x23a   : > { %v1474_v63 = vadd.f32 %v1473_v41, %v1472_v62 }
 0x23c   : > { %2003 = vtanh.f32 %v1474_v63  ;;  %1478 = vst [vmem:[#allocation6] sm:$0xff] %v1474_v63 }
 0x23d   : > { %2046 = shalt.err (!%p2043_p1)
}
 0x23e   : > { %s2047_s29 = scalar_lea.hbm %s2297_s5, 128 }
 0x23f   : > { %p2048_p5 = scmp.ne.s32.totalorder %s2297_s5, %s2047_s29  ;;  %p2053_p8 = scmp.lt.u32.totalorder %s2047_s29, %s2297_s5 }
 0x241   : > { %p2049_p7 = pnand %p2048_p5, %p1796_p4 }
 0x243   : > { %p2050_p9 = pneg %p2049_p7 }
 0x245   : > { %p2055_p2 = pnand %p2053_p8, %p2050_p9 }
 0x247   : > { %2058 = shalt.err (!%p2055_p2)
}
 0x248   : > { %1785 = dma.vmem_to_hbm [thread:$0]  (%p1796_p4), %s1498_s25, 128, %s2297_s5, [#allocation7]   ;;  %v2002_v0 = vpop.eup %2001 }
 0x249   : > { %s2113_s11 = smov [#allocation5]   ;;  %v2004_v1 = vpop.eup %2003 }
 0x24a   : > { %s1486_s12 = sshll.u32 %s2113_s11, 4  ;;  %v1476_v2 = vmul.f32 %v2004_v1, %v2002_v0  ;;  %s1487_s12 = int_to_ptr.vmem [resolvable:$true] %s1486_s12 }
 0x24b   : > { %s2059_s13 = scalar_lea.vmem %s1487_s12, 128  ;;  %p2066_p11 = scmp.lt.s32.totalorder %s1487_s12, %s1487_s12 }
 0x24c   : > { %1477 = vst [vmem:[#allocation5] sm:$0xff] %v1476_v2  ;;  %p2060_p3 = scmp.ne.s32.totalorder %s1487_s12, %s2059_s13  ;;  %p2067_p12 = scmp.lt.s32.totalorder %s2059_s13, %s2059_s13 }
 0x24e   : > { %p2061_p6 = pnand %p2060_p3, %p1796_p4  ;;  %p2068_p13 = por %p2067_p12, %p2066_p11 }
 0x250   : > { %p2062_p10 = pneg %p2061_p6 }
 0x252   : > { %p2069_p0 = pnand %p2068_p13, %p2062_p10 }
 0x254   : > { %2072 = shalt.err (!%p2069_p0)
}
 0x255   : > { %s2073_s16 = scalar_lea.hbm %s2296_s4, 128 }
 0x256   : > { %p2074_p1 = scmp.ne.s32.totalorder %s2296_s4, %s2073_s16  ;;  %p2079_p9 = scmp.lt.u32.totalorder %s2073_s16, %s2296_s4 }
 0x258   : > { %p2075_p5 = pnand %p2074_p1, %p1796_p4 }
 0x25a   : > { %p2076_p7 = pneg %p2075_p5 }
 0x25c   : > { %p2081_p8 = pnand %p2079_p9, %p2076_p7 }
 0x25e   : > { %2084 = shalt.err (!%p2081_p8)
}
 0x25f   : > { %1783 = dma.vmem_to_hbm [thread:$0]  (%p1796_p4), %s1487_s12, 128, %s2296_s4, [#allocation4]  }
 0x260   : > { %2094 = dma.done.wait (%p1796_p4), [#allocation4], 128  }
 0x261   : > { %2096 = vsyncadd (%p1796_p4), [#allocation4], 4294967168 }
 0x262   : > { %2098 = dma.done.wait (%p1796_p4), [#allocation7], 128  }
 0x263   : > { %2100 = vsyncadd (%p1796_p4), [#allocation7], 4294967168 }
 0x264 PF: > { %s19_s18 = sadd.s32 1, %s2103_s18  }
 0x265   : > { %p16_p2 = scmp.ge.s32.totalorder %s19_s18, 6  }
 0x267   :  { %18 = sbr.rel (!%p16_p2) target bundleno = 3 (0x3), region = 84 }
 0x26e   :  { %1514 = vsyncpa [#allocation3], 1 }
 0x26f   :  { %1516 = vsyncpa [#allocation3 + $0x1], 1 }
 0x270   :  { %1517 = vsyncpa [#allocation4], 1 }
 0x271   :  { %1519 = vsyncpa [#allocation4 + $0x1], 1 }
 0x272   :  { %1520 = vsyncpa [#allocation7], 1 }

</bundles_post_ra>
